<compile_context>
chip_gen: v7x
topology: tpu7x:2x2x1
jax: 0.10.0
libtpu: 0.0.40
codegen_flags: <defaults>
</compile_context>

<pallas_src>
import functools

import jax
import jax.numpy as jnp
from jax.experimental import pallas as pl
from jax.experimental.pallas import tpu as pltpu


def _round_up(n, m):
    return ((n + m - 1) // m) * m


def _cdiv(a, b):
    return -(-a // b)


# Only split the batch into >=2 grid steps (for v7x megacore / prefetch overlap)
# once there is at least this much work; tiny batches stay single-tile.
_MIN_SPLIT_ROWS = 512


def encoder_kernel(
    x_ref, xlat_ref,
    w1_ref, b1_ref,
    w2_ref, b2_ref,
    wf_ref, wl_ref, bf_ref,      # fused (fc4 -> clf_fc1 z-branch) weight/bias + x_lat branch
    wc2_ref, bc2_ref,
    wc3_ref, bc3_ref,            # clf_fc3, lane-padded to 128 logit columns (-1e30 bias pad)
    out_ref,                     # (tb, num_classes) f32
):
    f32 = jnp.float32
    mm = w1_ref.dtype            # bf16 (fast MXU path) or f32

    # --- Encoder.model: fc1 -> relu -> fc2 -> relu ---
    x = x_ref[...].astype(mm)
    h = jnp.dot(x, w1_ref[...], preferred_element_type=f32) + b1_ref[...]
    h = jnp.maximum(h, 0.0)
    h = jnp.dot(h.astype(mm), w2_ref[...], preferred_element_type=f32) + b2_ref[...]
    h = jnp.maximum(h, 0.0)

    # --- fc4 fused into Classifier.fc1 (z branch); x_lat branch split out ---
    # c_pre = h @ (w4^T wc1z^T) + x_lat @ wc1l^T + (b4 wc1z^T + bc1)
    c = (jnp.dot(h.astype(mm), wf_ref[...], preferred_element_type=f32)
         + jnp.dot(xlat_ref[...].astype(mm), wl_ref[...], preferred_element_type=f32)
         + bf_ref[...])
    c = jnp.maximum(c, 0.0)

    # --- Classifier.fc2 -> relu -> fc3 (128 lane-padded logits) -> softmax ---
    c = jnp.dot(c.astype(mm), wc2_ref[...], preferred_element_type=f32) + bc2_ref[...]
    c = jnp.maximum(c, 0.0)
    logits = jnp.dot(c.astype(mm), wc3_ref[...], preferred_element_type=f32) + bc3_ref[...]

    m = jnp.max(logits, axis=1, keepdims=True)
    e = jnp.exp(logits - m)                                   # padded cols -> exp(-1e30) == 0
    denom = jnp.sum(e, axis=1, keepdims=True)
    probs = e * pl.reciprocal(denom, approx=True)
    # Store only the real classes: (tb, num_classes) -> far fewer HBM write bytes
    # and no separate post-slice pass in the wrapper.
    out_ref[...] = probs[:, :out_ref.shape[-1]].astype(out_ref.dtype)


def _linear_params(key, in_features, out_features):
    """PyTorch-style deterministic init: U(-1/sqrt(fan_in), 1/sqrt(fan_in))."""
    kw, kb = jax.random.split(key)
    bound = 1.0 / jnp.sqrt(jnp.float32(in_features))
    w = jax.random.uniform(kw, (out_features, in_features), jnp.float32, -bound, bound)
    b = jax.random.uniform(kb, (out_features,), jnp.float32, -bound, bound)
    return w, b


def init_encoder_params(key, hidden_dims=100, in_features=10,
                        clf_hidden=100, clf_in=100, num_classes=24):
    ks = jax.random.split(key, 7)
    p = {}
    p["enc_fc1"] = _linear_params(ks[0], in_features, hidden_dims)
    p["enc_fc2"] = _linear_params(ks[1], hidden_dims, hidden_dims)
    # enc fc3 exists in __init__ but is unused in forward; skipped.
    p["enc_fc4"] = _linear_params(ks[2], hidden_dims, 2)
    p["clf_fc1"] = _linear_params(ks[3], clf_in, clf_hidden)
    p["clf_fc2"] = _linear_params(ks[4], clf_hidden, clf_hidden)
    p["clf_fc3"] = _linear_params(ks[5], clf_hidden, num_classes)
    return p


@functools.partial(jax.jit, static_argnames=("use_bf16", "block_b"))
def encoder_forward(x, x_lat, params, *, use_bf16=True, block_b=2048):
    B, in_features = x.shape
    lat = x_lat.shape[1]

    w1, b1 = params["enc_fc1"]
    w2, b2 = params["enc_fc2"]
    w4, b4 = params["enc_fc4"]
    wc1, bc1 = params["clf_fc1"]
    wc2, bc2 = params["clf_fc2"]
    wc3, bc3 = params["clf_fc3"]

    hidden = w1.shape[0]
    num_classes = wc3.shape[0]
    hp = _round_up(hidden, 128)            # hidden padded to a full lane group
    out_pad = _round_up(num_classes, 128)  # logits computed lane-dense

    # --- Fuse fc4 -> clf_fc1 z-branch (no nonlinearity in between, identical math) ---
    wc1z = wc1[:, :2]                      # acts on z            (hidden, 2)
    wc1l = wc1[:, 2:]                      # acts on x_lat        (hidden, lat)
    w_fused = w4.T @ wc1z.T                # (hidden, hidden), in->out layout
    b_fused = b4 @ wc1z.T + bc1            # (hidden,)

    mm_dtype = jnp.bfloat16 if use_bf16 else jnp.float32

    def wpad(w_in_out, in_dim, out_dim):   # (in, out) weight, zero-padded, MXU dtype
        buf = jnp.zeros((in_dim, out_dim), jnp.float32)
        buf = buf.at[:w_in_out.shape[0], :w_in_out.shape[1]].set(w_in_out)
        return buf.astype(mm_dtype)

    def bpad(b, out_dim, fill=0.0):        # bias as (1, out_dim) f32 row
        buf = jnp.full((1, out_dim), fill, jnp.float32)
        return buf.at[0, :b.shape[0]].set(b)

    # --- Batch tiling: minimal padding, >=2 grid steps for large batches (v7x megacore) ---
    b8 = _round_up(B, 8)
    n_steps = max(_cdiv(b8, block_b), 2 if b8 >= _MIN_SPLIT_ROWS else 1)
    tb = _round_up(_cdiv(b8, n_steps), 8)
    b_pad = tb * n_steps

    if b_pad != B:
        # Fuse the bf16 cast into the pad copy that has to happen anyway
        # (no standalone cast pass; halves the x/x_lat HBM read on the bf16 path).
        pad = ((0, b_pad - B), (0, 0))
        x = jnp.pad(x, pad).astype(mm_dtype)
        x_lat = jnp.pad(x_lat, pad).astype(mm_dtype)

    operands = (
        x, x_lat,
        wpad(w1.T, in_features, hp), bpad(b1, hp),
        wpad(w2.T, hp, hp), bpad(b2, hp),
        wpad(w_fused, hp, hp), wpad(wc1l.T, lat, hp), bpad(b_fused, hp),
        wpad(wc2.T, hp, hp), bpad(bc2, hp),
        wpad(wc3.T, hp, out_pad), bpad(bc3, out_pad, fill=-1e30),
    )

    def resident(arr):                     # weights/biases: same block every grid step
        return pl.BlockSpec(arr.shape, lambda i: (0, 0))

    in_specs = [
        pl.BlockSpec((tb, in_features), lambda i: (i, 0)),   # x
        pl.BlockSpec((tb, lat), lambda i: (i, 0)),           # x_lat
    ] + [resident(op) for op in operands[2:]]

    out = pl.pallas_call(
        encoder_kernel,
        out_shape=jax.ShapeDtypeStruct((b_pad, num_classes), jnp.float32),
        grid=(n_steps,),
        in_specs=in_specs,
        out_specs=pl.BlockSpec((tb, num_classes), lambda i: (i, 0)),
        compiler_params=pltpu.CompilerParams(
            dimension_semantics=("parallel",),
            vmem_limit_bytes=32 * 1024 * 1024,   # v5e default (16 MiB) is too small for big tiles
        ),
    )(*operands)

    return out if b_pad == B else out[:B]


def encoder_forward_ref(x, x_lat, params):
    """Pure-JAX reference for correctness checking (mirrors the PyTorch forward)."""
    def lin(h, wb):
        w, b = wb
        return h @ w.T + b

    h = jax.nn.relu(lin(x, params["enc_fc1"]))
    h = jax.nn.relu(lin(h, params["enc_fc2"]))
    z = lin(h, params["enc_fc4"])
    xc = jnp.concatenate([z, x_lat], axis=1)
    c = jax.nn.relu(lin(xc, params["clf_fc1"]))
    c = jax.nn.relu(lin(c, params["clf_fc2"]))
    logits = lin(c, params["clf_fc3"])
    return jax.nn.softmax(logits, axis=1)


if __name__ == "__main__":
    key = jax.random.PRNGKey(0)
    k_param, k_x, k_lat, k_x2, k_lat2 = jax.random.split(key, 5)

    B = 8
    IN_FEATURES = 10          # Encoder in_features
    CLF_IN = 100              # Classifier in_features
    LAT_DIM = CLF_IN - 2      # x_lat width so concat([z, x_lat]) has 100 features

    params = init_encoder_params(k_param, hidden_dims=100, in_features=IN_FEATURES)

    x = jax.random.normal(k_x, (B, IN_FEATURES), jnp.float32)
    x_lat = jax.random.normal(k_lat, (B, LAT_DIM), jnp.float32)
    ref = encoder_forward_ref(x, x_lat, params)

    # Exact-precision path (f32 MXU operands): tight check.
    out_f32 = jax.block_until_ready(encoder_forward(x, x_lat, params, use_bf16=False))
    assert out_f32.shape == (B, 24), out_f32.shape
    assert jnp.allclose(out_f32, ref, atol=1e-3, rtol=1e-3), "f32 kernel mismatch vs JAX reference"

    # Fast path (bf16 MXU operands, f32 accumulation): relaxed tolerance.
    out_bf16 = jax.block_until_ready(encoder_forward(x, x_lat, params, use_bf16=True))
    assert out_bf16.shape == (B, 24), out_bf16.shape
    assert jnp.allclose(out_bf16, ref, atol=2e-2, rtol=0), "bf16 kernel mismatch vs JAX reference"
    assert jnp.all(jnp.abs(jnp.sum(out_bf16, axis=1) - 1.0) < 2e-2), "softmax rows do not sum to 1"

    # Multi-step grid + batch-padding path (exercises tiling / partial-last-tile handling).
    B2 = 300
    x2 = jax.random.normal(k_x2, (B2, IN_FEATURES), jnp.float32)
    x_lat2 = jax.random.normal(k_lat2, (B2, LAT_DIM), jnp.float32)
    ref2 = encoder_forward_ref(x2, x_lat2, params)
    out2 = jax.block_until_ready(
        encoder_forward(x2, x_lat2, params, use_bf16=False, block_b=128))
    assert out2.shape == (B2, 24), out2.shape
    assert jnp.allclose(out2, ref2, atol=1e-3, rtol=1e-3), "tiled kernel mismatch vs JAX reference"

    print("KERNEL_OK")
</pallas_src>

<mosaic_0001>
module attributes {stable_mosaic.version = 11 : i64} {
  func.func @encoder_kernel(%arg0: i32, %arg1: memref<8x10xf32, #tpu.memory_space<vmem>>, %arg2: memref<8x98xf32, #tpu.memory_space<vmem>>, %arg3: memref<10x128xf32, #tpu.memory_space<vmem>>, %arg4: memref<1x128xf32, #tpu.memory_space<vmem>>, %arg5: memref<128x128xf32, #tpu.memory_space<vmem>>, %arg6: memref<1x128xf32, #tpu.memory_space<vmem>>, %arg7: memref<128x128xf32, #tpu.memory_space<vmem>>, %arg8: memref<98x128xf32, #tpu.memory_space<vmem>>, %arg9: memref<1x128xf32, #tpu.memory_space<vmem>>, %arg10: memref<128x128xf32, #tpu.memory_space<vmem>>, %arg11: memref<1x128xf32, #tpu.memory_space<vmem>>, %arg12: memref<128x128xf32, #tpu.memory_space<vmem>>, %arg13: memref<1x128xf32, #tpu.memory_space<vmem>>, %arg14: memref<8x24xf32, #tpu.memory_space<vmem>>) attributes {dimension_semantics = [#tpu.dimension_semantics<parallel>], iteration_bounds = array<i64: 1>, scalar_prefetch = 0 : i64, scratch_operands = 0 : i64, tpu.core_type = #tpu.core_type<tc>, window_params = [{transform_indices = @transform_0, window_bounds = array<i64: 8, 10>}, {transform_indices = @transform_1, window_bounds = array<i64: 8, 98>}, {pipeline_mode = #tpu.pipeline_mode<synchronous>, transform_indices = @transform_2, window_bounds = array<i64: 10, 128>}, {pipeline_mode = #tpu.pipeline_mode<synchronous>, transform_indices = @transform_3, window_bounds = array<i64: 1, 128>}, {pipeline_mode = #tpu.pipeline_mode<synchronous>, transform_indices = @transform_4, window_bounds = array<i64: 128, 128>}, {pipeline_mode = #tpu.pipeline_mode<synchronous>, transform_indices = @transform_5, window_bounds = array<i64: 1, 128>}, {pipeline_mode = #tpu.pipeline_mode<synchronous>, transform_indices = @transform_6, window_bounds = array<i64: 128, 128>}, {pipeline_mode = #tpu.pipeline_mode<synchronous>, transform_indices = @transform_7, window_bounds = array<i64: 98, 128>}, {pipeline_mode = #tpu.pipeline_mode<synchronous>, transform_indices = @transform_8, window_bounds = array<i64: 1, 128>}, {pipeline_mode = #tpu.pipeline_mode<synchronous>, transform_indices = @transform_9, window_bounds = array<i64: 128, 128>}, {pipeline_mode = #tpu.pipeline_mode<synchronous>, transform_indices = @transform_10, window_bounds = array<i64: 1, 128>}, {pipeline_mode = #tpu.pipeline_mode<synchronous>, transform_indices = @transform_11, window_bounds = array<i64: 128, 128>}, {pipeline_mode = #tpu.pipeline_mode<synchronous>, transform_indices = @transform_12, window_bounds = array<i64: 1, 128>}, {transform_indices = @transform_13, window_bounds = array<i64: 8, 24>}]} {
    %c0 = arith.constant 0 : index
    %c0_0 = arith.constant 0 : index
    %0 = vector.load %arg1[%c0, %c0_0] : memref<8x10xf32, #tpu.memory_space<vmem>>, vector<8x10xf32>
    %c0_1 = arith.constant 0 : index
    %c0_2 = arith.constant 0 : index
    %1 = vector.load %arg3[%c0_1, %c0_2] : memref<10x128xf32, #tpu.memory_space<vmem>>, vector<10x128xf32>
    %cst = arith.constant dense<0.000000e+00> : vector<8x128xf32>
    %2 = tpu.matmul %0, %1, %cst {dimension_numbers = #tpu.dot_dimension_numbers<[1], [0], [0], [1], [0, 0, 1, 1], [], []>} : vector<8x10xf32>, vector<10x128xf32>, vector<8x128xf32> -> vector<8x128xf32>
    %c0_3 = arith.constant 0 : index
    %c0_4 = arith.constant 0 : index
    %3 = vector.load %arg4[%c0_3, %c0_4] : memref<1x128xf32, #tpu.memory_space<vmem>>, vector<1x128xf32>
    %4 = vector.broadcast %3 : vector<1x128xf32> to vector<8x128xf32>
    %5 = arith.addf %2, %4 : vector<8x128xf32>
    %cst_5 = arith.constant 0.000000e+00 : f32
    %6 = vector.broadcast %cst_5 : f32 to vector<8x128xf32>
    %7 = arith.maximumf %5, %6 : vector<8x128xf32>
    %c0_6 = arith.constant 0 : index
    %c0_7 = arith.constant 0 : index
    %8 = vector.load %arg5[%c0_6, %c0_7] : memref<128x128xf32, #tpu.memory_space<vmem>>, vector<128x128xf32>
    %cst_8 = arith.constant dense<0.000000e+00> : vector<8x128xf32>
    %9 = tpu.matmul %7, %8, %cst_8 {dimension_numbers = #tpu.dot_dimension_numbers<[1], [0], [0], [1], [0, 0, 1, 1], [], []>} : vector<8x128xf32>, vector<128x128xf32>, vector<8x128xf32> -> vector<8x128xf32>
    %c0_9 = arith.constant 0 : index
    %c0_10 = arith.constant 0 : index
    %10 = vector.load %arg6[%c0_9, %c0_10] : memref<1x128xf32, #tpu.memory_space<vmem>>, vector<1x128xf32>
    %11 = vector.broadcast %10 : vector<1x128xf32> to vector<8x128xf32>
    %12 = arith.addf %9, %11 : vector<8x128xf32>
    %cst_11 = arith.constant 0.000000e+00 : f32
    %13 = vector.broadcast %cst_11 : f32 to vector<8x128xf32>
    %14 = arith.maximumf %12, %13 : vector<8x128xf32>
    %c0_12 = arith.constant 0 : index
    %c0_13 = arith.constant 0 : index
    %15 = vector.load %arg7[%c0_12, %c0_13] : memref<128x128xf32, #tpu.memory_space<vmem>>, vector<128x128xf32>
    %cst_14 = arith.constant dense<0.000000e+00> : vector<8x128xf32>
    %16 = tpu.matmul %14, %15, %cst_14 {dimension_numbers = #tpu.dot_dimension_numbers<[1], [0], [0], [1], [0, 0, 1, 1], [], []>} : vector<8x128xf32>, vector<128x128xf32>, vector<8x128xf32> -> vector<8x128xf32>
    %c0_15 = arith.constant 0 : index
    %c0_16 = arith.constant 0 : index
    %17 = vector.load %arg2[%c0_15, %c0_16] : memref<8x98xf32, #tpu.memory_space<vmem>>, vector<8x98xf32>
    %c0_17 = arith.constant 0 : index
    %c0_18 = arith.constant 0 : index
    %18 = vector.load %arg8[%c0_17, %c0_18] : memref<98x128xf32, #tpu.memory_space<vmem>>, vector<98x128xf32>
    %cst_19 = arith.constant dense<0.000000e+00> : vector<8x128xf32>
    %19 = tpu.matmul %17, %18, %cst_19 {dimension_numbers = #tpu.dot_dimension_numbers<[1], [0], [0], [1], [0, 0, 1, 1], [], []>} : vector<8x98xf32>, vector<98x128xf32>, vector<8x128xf32> -> vector<8x128xf32>
    %20 = arith.addf %16, %19 : vector<8x128xf32>
    %c0_20 = arith.constant 0 : index
    %c0_21 = arith.constant 0 : index
    %21 = vector.load %arg9[%c0_20, %c0_21] : memref<1x128xf32, #tpu.memory_space<vmem>>, vector<1x128xf32>
    %22 = vector.broadcast %21 : vector<1x128xf32> to vector<8x128xf32>
    %23 = arith.addf %20, %22 : vector<8x128xf32>
    %cst_22 = arith.constant 0.000000e+00 : f32
    %24 = vector.broadcast %cst_22 : f32 to vector<8x128xf32>
    %25 = arith.maximumf %23, %24 : vector<8x128xf32>
    %c0_23 = arith.constant 0 : index
    %c0_24 = arith.constant 0 : index
    %26 = vector.load %arg10[%c0_23, %c0_24] : memref<128x128xf32, #tpu.memory_space<vmem>>, vector<128x128xf32>
    %cst_25 = arith.constant dense<0.000000e+00> : vector<8x128xf32>
    %27 = tpu.matmul %25, %26, %cst_25 {dimension_numbers = #tpu.dot_dimension_numbers<[1], [0], [0], [1], [0, 0, 1, 1], [], []>} : vector<8x128xf32>, vector<128x128xf32>, vector<8x128xf32> -> vector<8x128xf32>
    %c0_26 = arith.constant 0 : index
    %c0_27 = arith.constant 0 : index
    %28 = vector.load %arg11[%c0_26, %c0_27] : memref<1x128xf32, #tpu.memory_space<vmem>>, vector<1x128xf32>
    %29 = vector.broadcast %28 : vector<1x128xf32> to vector<8x128xf32>
    %30 = arith.addf %27, %29 : vector<8x128xf32>
    %cst_28 = arith.constant 0.000000e+00 : f32
    %31 = vector.broadcast %cst_28 : f32 to vector<8x128xf32>
    %32 = arith.maximumf %30, %31 : vector<8x128xf32>
    %c0_29 = arith.constant 0 : index
    %c0_30 = arith.constant 0 : index
    %33 = vector.load %arg12[%c0_29, %c0_30] : memref<128x128xf32, #tpu.memory_space<vmem>>, vector<128x128xf32>
    %cst_31 = arith.constant dense<0.000000e+00> : vector<8x128xf32>
    %34 = tpu.matmul %32, %33, %cst_31 {dimension_numbers = #tpu.dot_dimension_numbers<[1], [0], [0], [1], [0, 0, 1, 1], [], []>} : vector<8x128xf32>, vector<128x128xf32>, vector<8x128xf32> -> vector<8x128xf32>
    %c0_32 = arith.constant 0 : index
    %c0_33 = arith.constant 0 : index
    %35 = vector.load %arg13[%c0_32, %c0_33] : memref<1x128xf32, #tpu.memory_space<vmem>>, vector<1x128xf32>
    %36 = vector.broadcast %35 : vector<1x128xf32> to vector<8x128xf32>
    %37 = arith.addf %34, %36 : vector<8x128xf32>
    %cst_34 = arith.constant dense<0xFF800000> : vector<8xf32>
    %38 = vector.multi_reduction <maximumf>, %37, %cst_34 [1] : vector<8x128xf32> to vector<8xf32>
    %39 = vector.shape_cast %38 : vector<8xf32> to vector<8x1xf32>
    %40 = vector.broadcast %39 : vector<8x1xf32> to vector<8x128xf32>
    %41 = arith.subf %37, %40 : vector<8x128xf32>
    %42 = math.exp %41 : vector<8x128xf32>
    %cst_35 = arith.constant dense<0.000000e+00> : vector<8xf32>
    %43 = vector.multi_reduction <add>, %42, %cst_35 [1] : vector<8x128xf32> to vector<8xf32>
    %44 = vector.shape_cast %43 : vector<8xf32> to vector<8x1xf32>
    %45 = tpu.reciprocal %44 {approx = true} : vector<8x1xf32> -> vector<8x1xf32>
    %46 = vector.broadcast %45 : vector<8x1xf32> to vector<8x128xf32>
    %47 = arith.mulf %42, %46 : vector<8x128xf32>
    %48 = vector.extract_strided_slice %47 {offsets = [0, 0], sizes = [8, 24], strides = [1, 1]} : vector<8x128xf32> to vector<8x24xf32>
    %c0_36 = arith.constant 0 : index
    %c0_37 = arith.constant 0 : index
    %49 = vector.load %arg14[%c0_36, %c0_37] : memref<8x24xf32, #tpu.memory_space<vmem>>, vector<8x24xf32>
    tpu.vector_store %arg14[%c0_36, %c0_37], %48 {strides = array<i32>} : memref<8x24xf32, #tpu.memory_space<vmem>>, vector<8x24xf32>,
    return
  }
  func.func @transform_0(%arg0: i32) -> (i32, i32) {
    %c0_i32 = arith.constant 0 : i32
    %c0_i32_0 = arith.constant 0 : i32
    return %arg0, %c0_i32 : i32, i32
  }
  func.func @transform_1(%arg0: i32) -> (i32, i32) {
    %c0_i32 = arith.constant 0 : i32
    %c0_i32_0 = arith.constant 0 : i32
    return %arg0, %c0_i32 : i32, i32
  }
  func.func @transform_2(%arg0: i32) -> (i32, i32) {
    %c0_i32 = arith.constant 0 : i32
    %c0_i32_0 = arith.constant 0 : i32
    %c0_i32_1 = arith.constant 0 : i32
    return %c0_i32, %c0_i32_0 : i32, i32
  }
  func.func @transform_3(%arg0: i32) -> (i32, i32) {
    %c0_i32 = arith.constant 0 : i32
    %c0_i32_0 = arith.constant 0 : i32
    %c0_i32_1 = arith.constant 0 : i32
    return %c0_i32, %c0_i32_0 : i32, i32
  }
  func.func @transform_4(%arg0: i32) -> (i32, i32) {
    %c0_i32 = arith.constant 0 : i32
    %c0_i32_0 = arith.constant 0 : i32
    %c0_i32_1 = arith.constant 0 : i32
    return %c0_i32, %c0_i32_0 : i32, i32
  }
  func.func @transform_5(%arg0: i32) -> (i32, i32) {
    %c0_i32 = arith.constant 0 : i32
    %c0_i32_0 = arith.constant 0 : i32
    %c0_i32_1 = arith.constant 0 : i32
    return %c0_i32, %c0_i32_0 : i32, i32
  }
  func.func @transform_6(%arg0: i32) -> (i32, i32) {
    %c0_i32 = arith.constant 0 : i32
    %c0_i32_0 = arith.constant 0 : i32
    %c0_i32_1 = arith.constant 0 : i32
    return %c0_i32, %c0_i32_0 : i32, i32
  }
  func.func @transform_7(%arg0: i32) -> (i32, i32) {
    %c0_i32 = arith.constant 0 : i32
    %c0_i32_0 = arith.constant 0 : i32
    %c0_i32_1 = arith.constant 0 : i32
    return %c0_i32, %c0_i32_0 : i32, i32
  }
  func.func @transform_8(%arg0: i32) -> (i32, i32) {
    %c0_i32 = arith.constant 0 : i32
    %c0_i32_0 = arith.constant 0 : i32
    %c0_i32_1 = arith.constant 0 : i32
    return %c0_i32, %c0_i32_0 : i32, i32
  }
  func.func @transform_9(%arg0: i32) -> (i32, i32) {
    %c0_i32 = arith.constant 0 : i32
    %c0_i32_0 = arith.constant 0 : i32
    %c0_i32_1 = arith.constant 0 : i32
    return %c0_i32, %c0_i32_0 : i32, i32
  }
  func.func @transform_10(%arg0: i32) -> (i32, i32) {
    %c0_i32 = arith.constant 0 : i32
    %c0_i32_0 = arith.constant 0 : i32
    %c0_i32_1 = arith.constant 0 : i32
    return %c0_i32, %c0_i32_0 : i32, i32
  }
  func.func @transform_11(%arg0: i32) -> (i32, i32) {
    %c0_i32 = arith.constant 0 : i32
    %c0_i32_0 = arith.constant 0 : i32
    %c0_i32_1 = arith.constant 0 : i32
    return %c0_i32, %c0_i32_0 : i32, i32
  }
  func.func @transform_12(%arg0: i32) -> (i32, i32) {
    %c0_i32 = arith.constant 0 : i32
    %c0_i32_0 = arith.constant 0 : i32
    %c0_i32_1 = arith.constant 0 : i32
    return %c0_i32, %c0_i32_0 : i32, i32
  }
  func.func @transform_13(%arg0: i32) -> (i32, i32) {
    %c0_i32 = arith.constant 0 : i32
    %c0_i32_0 = arith.constant 0 : i32
    return %arg0, %c0_i32 : i32, i32
  }
}

</mosaic_0001>

<bundles_post_ra>
// kernel: encoder_forward.1
= control target key start
LH: loop header
LB: loop body
LE: loop exit
PB: predicated region body
PF: predicated region fallthrough
CT: control target
= control target key end

     0   :  { %vm59_vm0 = vcmask 1041408   ;;  %v1047_v2 = vmov 0.0|0.0   ;;  %vm1048_vm1 = vmmov 1   ;;  %vm1049_vm3 = vmmov 0   ;;  %s1446_s0 = inlined_call_operand.vmem [shape: f32[8,10], index: 0, kind: input, shape index: {}]   ;;  %s1447_s1 = inlined_call_operand.vmem [shape: f32[8,98], index: 1, kind: input, shape index: {}]   ;;  %s1448_s2 = inlined_call_operand.vmem [shape: f32[10,128], index: 2, kind: input, shape index: {}]   ;;  %s1449_s3 = inlined_call_operand.vmem [shape: f32[1,128], index: 3, kind: input, shape index: {}]   ;;  %s1450_s4 = inlined_call_operand.vmem [shape: f32[128,128], index: 4, kind: input, shape index: {}]   ;;  %s1451_s5 = inlined_call_operand.vmem [shape: f32[1,128], index: 5, kind: input, shape index: {}]   ;;  %s1452_s6 = inlined_call_operand.vmem [shape: f32[128,128], index: 6, kind: input, shape index: {}]   ;;  %s1453_s7 = inlined_call_operand.vmem [shape: f32[98,128], index: 7, kind: input, shape index: {}]   ;;  %s1454_s8 = inlined_call_operand.vmem [shape: f32[1,128], index: 8, kind: input, shape index: {}]   ;;  %s1455_s9 = inlined_call_operand.vmem [shape: f32[128,128], index: 9, kind: input, shape index: {}]   ;;  %s1456_s10 = inlined_call_operand.vmem [shape: f32[1,128], index: 10, kind: input, shape index: {}]   ;;  %s1457_s11 = inlined_call_operand.vmem [shape: f32[128,128], index: 11, kind: input, shape index: {}]   ;;  %s1458_s12 = inlined_call_operand.vmem [shape: f32[1,128], index: 12, kind: input, shape index: {}]   ;;  %s1459_s13 = inlined_call_operand.hbm [shape: f32[8,24], index: 13, kind: output, shape index: {}]  }
   0x1   :  { %v46_v0 = vld [vmem:[%s1448_s2] sm:$0xff]  ;;  %v47_v1 = vld [vmem:[%s1448_s2 + $0x8] sm:$0x3]  ;;  %896 = vmatprep.subr.bf16.mxu1 %v1047_v2  ;;  %vm898_vm2 = vmpackc.low %vm59_vm0, %vm1048_vm1  ;;  %924 = vmatprep.subr.bf16.mxu0 %v1047_v2  ;;  %v1050_v5 = vmov 0.0   ;;  %vm55_vm4 = vcmask 80896  }
   0x2   :  { %v897_v3 = vpack.c.bf16 %v47_v1, %v46_v0  ;;  %v134_v4 = vld [vmem:[%s1450_s4] sm:$0xff]  ;;  %724 = vmatprep.mubr.msk.f32.mxu1 %vm1049_vm3, %v1050_v5  ;;  %v135_v6 = vld [vmem:[%s1450_s4 + $0x8] sm:$0xff]  ;;  %788 = vmatprep.mubr.msk.f32.mxu0 %vm1049_vm3, %v1050_v5  ;;  %v136_v9 = vld [vmem:[%s1450_s4 + $0x10] sm:$0xff] }
   0x3   :  { %v45_v7 = vld [vmem:[%s1446_s0] sm:$0xff]  ;;  %v901_v8 = vpack.c.bf16 %v135_v6, %v134_v4  ;;  %v137_v10 = vld [vmem:[%s1450_s4 + $0x18] sm:$0xff] }
   0x4   :  { %899 = vmatpush3.bf16.msk.msra.mxu1 %vm898_vm2, %v897_v3 }
   0x5   :  { %900 = vmatprep.subr.bf16.mxu1 %v1047_v2 }
   0x7   :  { %725 = vmatmul.mubr.msk.f32.vlgmr.msra.gmra.mrb[0].mxu1 %vm55_vm4, %v45_v7 }
   0x8   :  { %18 = vsyncpa [#allocation3], 0  ;;  %902 = vmatpush3.bf16.msra.mxu1 %v901_v8  ;;  %v904_v11 = vpack.c.bf16 %v137_v10, %v136_v9  ;;  %759 = vmatprep.mubr.msk.f32.mxu1 %vm1049_vm3, %v1050_v5  ;;  %v138_v12 = vld [vmem:[%s1450_s4 + $0x20] sm:$0xff]  ;;  %v139_v13 = vld [vmem:[%s1450_s4 + $0x28] sm:$0xff]  ;;  %vm258_vm5 = vcmask 801792   ;;  %vm610_vm6 = vcmask 195584  }
   0x9   :  { %903 = vmatprep.subr.bf16.mxu1 %v1047_v2  ;;  %v907_v14 = vpack.c.bf16 %v139_v13, %v138_v12  ;;  %v140_v15 = vld [vmem:[%s1450_s4 + $0x30] sm:$0xff]  ;;  %v141_v16 = vld [vmem:[%s1450_s4 + $0x38] sm:$0xff]  ;;  %v142_v18 = vld [vmem:[%s1450_s4 + $0x40] sm:$0xff] }
   0xa   :  { %v910_v17 = vpack.c.bf16 %v141_v16, %v140_v15  ;;  %v143_v19 = vld [vmem:[%s1450_s4 + $0x48] sm:$0xff]  ;;  %v144_v21 = vld [vmem:[%s1450_s4 + $0x50] sm:$0xff]  ;;  %v145_v22 = vld [vmem:[%s1450_s4 + $0x58] sm:$0xff] }
   0xb   :  { %v913_v20 = vpack.c.bf16 %v143_v19, %v142_v18  ;;  %v916_v23 = vpack.c.bf16 %v145_v22, %v144_v21  ;;  %v146_v24 = vld [vmem:[%s1450_s4 + $0x60] sm:$0xff]  ;;  %v147_v25 = vld [vmem:[%s1450_s4 + $0x68] sm:$0xff]  ;;  %v148_v27 = vld [vmem:[%s1450_s4 + $0x70] sm:$0xff] }
   0xc   :  { %905 = vmatpush3.bf16.msra.mxu1 %v904_v11  ;;  %v919_v26 = vpack.c.bf16 %v147_v25, %v146_v24  ;;  %v149_v28 = vld [vmem:[%s1450_s4 + $0x78] sm:$0xff]  ;;  %v245_v30 = vld [vmem:[%s1453_s7] sm:$0xff]  ;;  %v246_v31 = vld [vmem:[%s1453_s7 + $0x8] sm:$0xff] }
   0xd   :  { %906 = vmatprep.subr.bf16.mxu1 %v1047_v2  ;;  %v922_v29 = vpack.c.bf16 %v149_v28, %v148_v27  ;;  %v247_v32 = vld [vmem:[%s1453_s7 + $0x10] sm:$0xff]  ;;  %v925_v33 = vpack.c.bf16 %v246_v31, %v245_v30  ;;  %v248_v34 = vld [vmem:[%s1453_s7 + $0x18] sm:$0xff]  ;;  %v249_v36 = vld [vmem:[%s1453_s7 + $0x20] sm:$0xff] }
   0xe   :  { %v928_v35 = vpack.c.bf16 %v248_v34, %v247_v32  ;;  %v250_v37 = vld [vmem:[%s1453_s7 + $0x28] sm:$0xff]  ;;  %v251_v39 = vld [vmem:[%s1453_s7 + $0x30] sm:$0xff]  ;;  %v252_v40 = vld [vmem:[%s1453_s7 + $0x38] sm:$0xff] }
   0xf   :  { %926 = vmatpush3.bf16.msra.mxu0 %v925_v33  ;;  %v931_v38 = vpack.c.bf16 %v250_v37, %v249_v36  ;;  %v934_v41 = vpack.c.bf16 %v252_v40, %v251_v39  ;;  %v253_v42 = vld [vmem:[%s1453_s7 + $0x40] sm:$0xff]  ;;  %v254_v43 = vld [vmem:[%s1453_s7 + $0x48] sm:$0xff]  ;;  %v255_v45 = vld [vmem:[%s1453_s7 + $0x50] sm:$0xff] }
  0x10   :  { %908 = vmatpush3.bf16.msra.mxu1 %v907_v14  ;;  %927 = vmatprep.subr.bf16.mxu0 %v1047_v2  ;;  %v937_v44 = vpack.c.bf16 %v254_v43, %v253_v42  ;;  %v256_v46 = vld [vmem:[%s1453_s7 + $0x58] sm:$0xff]  ;;  %v228_v48 = vld [vmem:[%s1452_s6] sm:$0xff]  ;;  %v229_v49 = vld [vmem:[%s1452_s6 + $0x8] sm:$0xff] }
  0x11   :  { %909 = vmatprep.subr.bf16.mxu1 %v1047_v2  ;;  %v940_v47 = vpack.c.bf16 %v256_v46, %v255_v45  ;;  %v257_v50 = vld [vmem:[%s1453_s7 + $0x60] sm:$0x3]  ;;  %v943_v52 = vpack.c.bf16 %v229_v49, %v228_v48  ;;  %v230_v53 = vld [vmem:[%s1452_s6 + $0x10] sm:$0xff]  ;;  %v231_v54 = vld [vmem:[%s1452_s6 + $0x18] sm:$0xff] }
  0x12   :  { %v244_v51 = vld [vmem:[%s1447_s1] sm:$0xff]  ;;  %v946_v55 = vpack.c.bf16 %v231_v54, %v230_v53  ;;  %v233_v57 = vld [vmem:[%s1452_s6 + $0x28] sm:$0xff]  ;;  %v234_v59 = vld [vmem:[%s1452_s6 + $0x30] sm:$0xff] }
  0x13   :  { %929 = vmatpush3.bf16.msra.mxu0 %v928_v35  ;;  %v232_v56 = vld [vmem:[%s1452_s6 + $0x20] sm:$0xff]  ;;  %v235_v60 = vld [vmem:[%s1452_s6 + $0x38] sm:$0xff]  ;;  %v237_v63 = vld [vmem:[%s1452_s6 + $0x48] sm:$0xff] }
  0x14   :  { %911 = vmatpush3.bf16.msra.mxu1 %v910_v17  ;;  %930 = vmatprep.subr.bf16.mxu0 %v1047_v2  ;;  %v949_v58 = vpack.c.bf16 %v233_v57, %v232_v56  ;;  %v952_v61 = vpack.c.bf16 %v235_v60, %v234_v59  ;;  %v236_v62 = vld [vmem:[%s1452_s6 + $0x40] sm:$0xff]  ;;  %v238_v1 = vld [vmem:[%s1452_s6 + $0x50] sm:$0xff]  ;;  %v239_v3 = vld [vmem:[%s1452_s6 + $0x58] sm:$0xff] }
  0x15   :  { %912 = vmatprep.subr.bf16.mxu1 %v1047_v2  ;;  %v955_v0 = vpack.c.bf16 %v237_v63, %v236_v62  ;;  %v958_v4 = vpack.c.bf16 %v239_v3, %v238_v1  ;;  %v240_v6 = vld [vmem:[%s1452_s6 + $0x60] sm:$0xff]  ;;  %v241_v7 = vld [vmem:[%s1452_s6 + $0x68] sm:$0xff]  ;;  %v242_v14 = vld [vmem:[%s1452_s6 + $0x70] sm:$0xff] }
  0x16   :  { %v961_v8 = vpack.c.bf16 %v241_v7, %v240_v6  ;;  %v626_v9 = vld [vmem:[%s1449_s3] ss:$0 sm:$0xff]  ;;  %v243_v15 = vld [vmem:[%s1452_s6 + $0x78] sm:$0xff]  ;;  %v415_v18 = vld [vmem:[%s1455_s9 + $0x8] sm:$0xff] }
  0x17   :  { %932 = vmatpush3.bf16.msra.mxu0 %v931_v38  ;;  %v964_v16 = vpack.c.bf16 %v243_v15, %v242_v14  ;;  %v414_v17 = vld [vmem:[%s1455_s9] sm:$0xff]  ;;  %v416_v19 = vld [vmem:[%s1455_s9 + $0x10] sm:$0xff]  ;;  %v417_v21 = vld [vmem:[%s1455_s9 + $0x18] sm:$0xff] }
  0x18   :  { %914 = vmatpush3.bf16.msra.mxu1 %v913_v20  ;;  %933 = vmatprep.subr.bf16.mxu0 %v1047_v2  ;;  %v967_v20 = vpack.c.bf16 %v415_v18, %v414_v17  ;;  %v970_v22 = vpack.c.bf16 %v417_v21, %v416_v19  ;;  %v419_v24 = vld [vmem:[%s1455_s9 + $0x28] sm:$0xff]  ;;  %v421_v27 = vld [vmem:[%s1455_s9 + $0x38] sm:$0xff]  ;;  %v424_v32 = vld [vmem:[%s1455_s9 + $0x50] sm:$0xff] }
  0x19   :  { %915 = vmatprep.subr.bf16.mxu1 %v1047_v2  ;;  %v423_v30 = vld [vmem:[%s1455_s9 + $0x48] sm:$0xff]  ;;  %v425_v33 = vld [vmem:[%s1455_s9 + $0x58] sm:$0xff]  ;;  %v629_v37 = vld [vmem:[%s1451_s5] ss:$0 sm:$0xff] }
  0x1a   :  { %v982_v34 = vpack.c.bf16 %v425_v33, %v424_v32  ;;  %v426_v42 = vld [vmem:[%s1455_s9 + $0x60] sm:$0xff]  ;;  %v427_v43 = vld [vmem:[%s1455_s9 + $0x68] sm:$0xff]  ;;  %v428_v45 = vld [vmem:[%s1455_s9 + $0x70] sm:$0xff] }
  0x1b   :  { %935 = vmatpush3.bf16.msra.mxu0 %v934_v41  ;;  %v509_v48 = vld [vmem:[%s1457_s11 + $0x8] sm:$0xff]  ;;  %v510_v49 = vld [vmem:[%s1457_s11 + $0x10] sm:$0xff]  ;;  %v512_v53 = vld [vmem:[%s1457_s11 + $0x20] sm:$0xff] }
  0x1c   :  { %917 = vmatpush3.bf16.msra.mxu1 %v916_v23  ;;  %936 = vmatprep.subr.bf16.mxu0 %v1047_v2  ;;  %v418_v23 = vld [vmem:[%s1455_s9 + $0x20] sm:$0xff]  ;;  %v513_v54 = vld [vmem:[%s1457_s11 + $0x28] sm:$0xff]  ;;  %v514_v56 = vld [vmem:[%s1457_s11 + $0x30] sm:$0xff] }
  0x1d   :  { %918 = vmatprep.subr.bf16.mxu1 %v1047_v2  ;;  %v973_v25 = vpack.c.bf16 %v419_v24, %v418_v23  ;;  %v515_v57 = vld [vmem:[%s1457_s11 + $0x38] sm:$0xff]  ;;  %v516_v59 = vld [vmem:[%s1457_s11 + $0x40] sm:$0xff]  ;;  %v517_v60 = vld [vmem:[%s1457_s11 + $0x48] sm:$0xff] }
  0x1e   :  { %v518_v62 = vld [vmem:[%s1457_s11 + $0x50] sm:$0xff]  ;;  %v519_v63 = vld [vmem:[%s1457_s11 + $0x58] sm:$0xff]  ;;  %v520_v1 = vld [vmem:[%s1457_s11 + $0x60] sm:$0xff] }
  0x1f   :  { %938 = vmatpush3.bf16.msra.mxu0 %v937_v44  ;;  %v985_v44 = vpack.c.bf16 %v427_v43, %v426_v42  ;;  %v521_v3 = vld [vmem:[%s1457_s11 + $0x68] sm:$0xff]  ;;  %v632_v7 = vld [vmem:[%s1454_s8] ss:$0 sm:$0xff] }
  0x20   :  { %920 = vmatpush3.bf16.msra.mxu1 %v919_v26  ;;  %939 = vmatprep.subr.bf16.mxu0 %v1047_v2  ;;  %v420_v26 = vld [vmem:[%s1455_s9 + $0x30] sm:$0xff]  ;;  %v634_v19 = vld [vmem:[%s1458_s12] ss:$0 sm:$0xff] }
  0x21   :  { %921 = vmatprep.subr.bf16.mxu1 %v1047_v2  ;;  %v976_v28 = vpack.c.bf16 %v421_v27, %v420_v26 }
  0x23   :  { %941 = vmatpush3.bf16.msra.mxu0 %v940_v47  ;;  %v508_v47 = vld [vmem:[%s1457_s11] sm:$0xff] }
  0x24   :  { %923 = vmatpush3.bf16.msra.mxu1 %v922_v29  ;;  %786 = vmatprep.subr.mxu0 %v1050_v5  ;;  %v422_v29 = vld [vmem:[%s1455_s9 + $0x40] sm:$0xff] }
  0x25   :  { %966 = vmatprep.subr.bf16.mxu1 %v1047_v2  ;;  %v979_v31 = vpack.c.bf16 %v423_v30, %v422_v29 }
  0x27   :  { %787 = vmatpush3.msk.msra.mxu0 %vm59_vm0, %v257_v50  ;;  %v991_v50 = vpack.c.bf16 %v509_v48, %v508_v47 }
  0x28   :  { %789 = vmatmul.mubr.msk.f32.vlgmr.msra.gmra.mrb[0].mxu0 %vm258_vm5, %v244_v51  ;;  %942 = vmatprep.subr.bf16.mxu0 %v1047_v2  ;;  %v511_v51 = vld [vmem:[%s1457_s11 + $0x18] sm:$0xff] }
  0x29   :  { %944 = vmatpush3.bf16.msra.mxu0 %v943_v52  ;;  %823 = vmatprep.mubr.msk.f32.mxu0 %vm1049_vm3, %v1050_v5  ;;  %v994_v52 = vpack.c.bf16 %v511_v51, %v510_v49 }
  0x2a   :  { %945 = vmatprep.subr.bf16.mxu0 %v1047_v2 }
  0x2d   :  { %947 = vmatpush3.bf16.msra.mxu0 %v946_v55  ;;  %v997_v55 = vpack.c.bf16 %v513_v54, %v512_v53 }
  0x2e   :  { %948 = vmatprep.subr.bf16.mxu0 %v1047_v2 }
  0x31   :  { %950 = vmatpush3.bf16.msra.mxu0 %v949_v58  ;;  %v1000_v58 = vpack.c.bf16 %v515_v57, %v514_v56 }
  0x32   :  { %951 = vmatprep.subr.bf16.mxu0 %v1047_v2 }
  0x35   :  { %953 = vmatpush3.bf16.msra.mxu0 %v952_v61  ;;  %v1003_v61 = vpack.c.bf16 %v517_v60, %v516_v59 }
  0x36   :  { %954 = vmatprep.subr.bf16.mxu0 %v1047_v2 }
  0x39   :  { %956 = vmatpush3.bf16.msra.mxu0 %v955_v0  ;;  %v1006_v0 = vpack.c.bf16 %v519_v63, %v518_v62 }
  0x3a   :  { %957 = vmatprep.subr.bf16.mxu0 %v1047_v2 }
  0x3d   :  { %959 = vmatpush3.bf16.msra.mxu0 %v958_v4  ;;  %v1009_v4 = vpack.c.bf16 %v521_v3, %v520_v1 }
  0x3e   :  { %960 = vmatprep.subr.bf16.mxu0 %v1047_v2 }
  0x41   :  { %962 = vmatpush3.bf16.msra.mxu0 %v961_v8 }
  0x42   :  { %963 = vmatprep.subr.bf16.mxu0 %v1047_v2 }
  0x45   :  { %965 = vmatpush3.bf16.msra.mxu0 %v964_v16 }
  0x46   :  { %990 = vmatprep.subr.bf16.mxu0 %v1047_v2 }
  0xda   :  { %v129_v10 = vpop.f32.mrb[0].mxu1 }
  0xdb   :  { %v130_v11 = vadd.f32 %v626_v9, %v129_v10  ;;  %v726_v12 = vpop.f32.mrb[1].mxu1 }
  0xdc   :  { %v522_v12 = vld [vmem:[%s1457_s11 + $0x70] sm:$0xff] }
  0xdd   :  { %v133_v13 = vmax.f32 %v130_v11, 0.0 }
  0xdf   :  { %760 = vmatmul.mubr.f32.vlgmr.msra.gmra.mrb[2].mxu1 %v133_v13  ;;  %v523_v13 = vld [vmem:[%s1457_s11 + $0x78] sm:$0xff] }
  0xe0   :  { %858 = vmatprep.mubr.msk.f32.mxu1 %vm1049_vm3, %v1050_v5  ;;  %968 = vmatpush3.bf16.msra.mxu1 %v967_v20  ;;  %v1012_v14 = vpack.c.bf16 %v523_v13, %v522_v12 }
  0xe1   :  { %969 = vmatprep.subr.bf16.mxu1 %v1047_v2 }
  0xe4   :  { %971 = vmatpush3.bf16.msra.mxu1 %v970_v22 }
  0xe5   :  { %972 = vmatprep.subr.bf16.mxu1 %v1047_v2 }
  0xe8   :  { %974 = vmatpush3.bf16.msra.mxu1 %v973_v25 }
  0xe9   :  { %975 = vmatprep.subr.bf16.mxu1 %v1047_v2 }
  0xec   :  { %977 = vmatpush3.bf16.msra.mxu1 %v976_v28 }
  0xed   :  { %978 = vmatprep.subr.bf16.mxu1 %v1047_v2 }
  0xf0   :  { %980 = vmatpush3.bf16.msra.mxu1 %v979_v31 }
  0xf1   :  { %981 = vmatprep.subr.bf16.mxu1 %v1047_v2 }
  0xf4   :  { %983 = vmatpush3.bf16.msra.mxu1 %v982_v34 }
  0xf5   :  { %984 = vmatprep.subr.bf16.mxu1 %v1047_v2 }
  0xf8   :  { %986 = vmatpush3.bf16.msra.mxu1 %v985_v44 }
  0xf9   :  { %987 = vmatprep.subr.bf16.mxu1 %v1047_v2 }
  0xfb   :  { %v331_v35 = vpop.f32.mrb[0].mxu0 }
  0xfc   :  { %v790_v36 = vpop.f32.mrb[1].mxu0 }
 0x1b2   :  { %v223_v38 = vpop.f32.mrb[2].mxu1 }
 0x1b3   :  { %v224_v39 = vadd.f32 %v629_v37, %v223_v38  ;;  %v761_v40 = vpop.f32.mrb[3].mxu1 }
 0x1b5   :  { %v227_v41 = vmax.f32 %v224_v39, 0.0 }
 0x1b7   :  { %824 = vmatmul.mubr.f32.vlgmr.msra.gmra.mrb[2].mxu0 %v227_v41 }
 0x1b8   :  { %893 = vmatprep.mubr.msk.f32.mxu0 %vm1049_vm3, %v1050_v5  ;;  %v429_v5 = vld [vmem:[%s1455_s9 + $0x78] sm:$0xff]  ;;  %992 = vmatpush3.bf16.msra.mxu0 %v991_v50 }
 0x1b9   :  { %v988_v46 = vpack.c.bf16 %v429_v5, %v428_v45  ;;  %993 = vmatprep.subr.bf16.mxu0 %v1047_v2 }
 0x1bb   :  { %989 = vmatpush3.bf16.msra.mxu1 %v988_v46 }
 0x1bc   :  { %995 = vmatpush3.bf16.msra.mxu0 %v994_v52 }
 0x1bd   :  { %996 = vmatprep.subr.bf16.mxu0 %v1047_v2 }
 0x1c0   :  { %998 = vmatpush3.bf16.msra.mxu0 %v997_v55 }
 0x1c1   :  { %999 = vmatprep.subr.bf16.mxu0 %v1047_v2 }
 0x1c4   :  { %1001 = vmatpush3.bf16.msra.mxu0 %v1000_v58 }
 0x1c5   :  { %1002 = vmatprep.subr.bf16.mxu0 %v1047_v2 }
 0x1c8   :  { %1004 = vmatpush3.bf16.msra.mxu0 %v1003_v61 }
 0x1c9   :  { %1005 = vmatprep.subr.bf16.mxu0 %v1047_v2 }
 0x1cc   :  { %1007 = vmatpush3.bf16.msra.mxu0 %v1006_v0 }
 0x1cd   :  { %1008 = vmatprep.subr.bf16.mxu0 %v1047_v2 }
 0x1d0   :  { %1010 = vmatpush3.bf16.msra.mxu0 %v1009_v4 }
 0x1d1   :  { %1011 = vmatprep.subr.bf16.mxu0 %v1047_v2  ;;  %v633_v2 = vld [vmem:[%s1456_s10] ss:$0 sm:$0xff]  ;;  %s1051_s10 = smov [#allocation2]  }
 0x1d2   :  { %s618_s11 = sshll.u32 %s1051_s10, 4  ;;  %s619_s11 = int_to_ptr.vmem [resolvable:$true] %s618_s11 }
 0x1d3   :  { %s1023_s12 = scalar_lea.vmem %s619_s11, 128  ;;  %p1028_p1 = scmp.lt.s32.totalorder %s619_s11, %s619_s11 }
 0x1d4   :  { %1013 = vmatpush3.bf16.msra.mxu0 %v1012_v14  ;;  %p1024_p0 = scmp.ne.s32.totalorder %s619_s11, %s1023_s12  ;;  %p1029_p2 = scmp.lt.s32.totalorder %s1023_s12, %s1023_s12 }
 0x1d6   :  { %p1030_p3 = por %p1029_p2, %p1028_p1 }
 0x1d8   :  { %p1031_p4 = pnand %p1030_p3, %p1024_p0 }
 0x28a   :  { %v401_v6 = vpop.f32.mrb[2].mxu0 }
 0x28b   :  { %v402_v8 = vadd.f32 %v401_v6, %v331_v35  ;;  %v825_v9 = vpop.f32.mrb[3].mxu0 }
 0x28d   :  { %v412_v10 = vadd.f32 %v632_v7, %v402_v8 }
 0x28f   :  { %v413_v11 = vmax.f32 %v412_v10, 0.0 }
 0x291   :  { %859 = vmatmul.mubr.f32.vlgmr.msra.gmra.mrb[4].mxu1 %v413_v11 }
 0x364   :  { %v503_v15 = vpop.f32.mrb[4].mxu1 }
 0x365   :  { %v504_v16 = vadd.f32 %v633_v2, %v503_v15  ;;  %v860_v17 = vpop.f32.mrb[5].mxu1 }
 0x367   :  { %v507_v18 = vmax.f32 %v504_v16, 0.0 }
 0x369   :  { %894 = vmatmul.mubr.f32.vlgmr.msra.gmra.mrb[4].mxu0 %v507_v18 }
 0x43c   :  { %v597_v20 = vpop.f32.mrb[4].mxu0 }
 0x43d   :  { %v598_v21 = vadd.f32 %v634_v19, %v597_v20  ;;  %v895_v22 = vpop.f32.mrb[5].mxu0 }
 0x43f   :  { %601 = vmax.xlane.f32.xlu0 %v598_v21 }
 0x4cc   :  { %v602_v23 = vpop.xlane.xlu0 %601 }
 0x4cd   :  { %v603_v24 = vsub.f32 %v598_v21, %v602_v23 }
 0x4cf   :  { %v604_v25 = vmul.f32 1.442695, %v603_v24 }
 0x4d1   :  { %1019 = vpow2.f32 %v604_v25 }
 0x4db   :  { %v1020_v26 = vpop.eup %1019 }
 0x4dc   :  { %606 = vadd.xlane.f32.xlu0 %v1020_v26 }
 0x569   :  { %v607_v27 = vpop.xlane.xlu0 %606 }
 0x56a   :  { %1021 = vrcp.f32 %v607_v27 }
 0x574   :  { %v1022_v28 = vpop.eup %1021 }
 0x575   :  { %v609_v29 = vmul.f32 %v1022_v28, %v1020_v26 }
 0x577   :  { %611 = vst.msk [vmem:[#allocation2] sm:$0xff] %vm610_vm6, %v609_v29 }
 0x578   :  { %1034 = shalt.err (!%p1031_p4)
}
 0x579   :  { %s1035_s7 = scalar_lea.hbm %s1459_s13, 128 }
 0x57a   :  { %p1036_p5 = scmp.ne.s32.totalorder %s1459_s13, %s1035_s7  ;;  %p1039_p6 = scmp.lt.u32.totalorder %s1035_s7, %s1459_s13 }
 0x57c   :  { %p1041_p7 = pnand %p1039_p6, %p1036_p5 }
 0x57e   :  { %1044 = shalt.err (!%p1041_p7)
}
 0x57f   :  { %621 = dma.vmem_to_hbm [thread:$0]  %s619_s11, 128, %s1459_s13, [#allocation3]  }
 0x580   :  { %1045 = dma.done.wait [#allocation3], 128  }
 0x581   :  { %1046 = vsyncadd [#allocation3], 4294967168 }
 0x582   :  { %625 = vsyncpa [#allocation3], 1 }

</bundles_post_ra>
